<compile_context>
chip_gen: v7x
topology: tpu7x:2x2x1
jax: 0.10.0
libtpu: 0.0.40
codegen_flags: <defaults>
</compile_context>

<pallas_src>
import functools

import jax
import jax.numpy as jnp
from jax.experimental import pallas as pl
from jax.experimental.pallas import tpu as pltpu


def _cdiv(a, b):
    return -(-a // b)


def _odconv_kernel(b_tile, K, N, CH, activation,
                   x_ref, g_ref, w_ref, bias_ref, o_ref):
    # x_ref    : [b_tile*N, L*C]   rows (b, n) of this batch tile, cols (l, c)
    # g_ref    : [K*N, N]          g_ref[o*N + m, n] = T0[o, n, m]
    # w_ref    : [L*C, K*C*H]      destination graph T1 folded into W; cols (o, d, h)
    # bias_ref : [1, C*H]          bias tiled over destination nodes d  (f32)
    # o_ref    : [b_tile*N, C*H]   rows (b, m), cols (d, h)

    # Stage 1: destination-graph + weight contraction for ALL K origin orders and
    # ALL b_tile*N rows in a single lane-dense MXU dot.
    u = jnp.dot(x_ref[...], w_ref[...],
                preferred_element_type=jnp.float32)       # [b_tile*N, K*C*H]
    # bf16 param path: make the stage-2 dots genuine bf16 MXU matmuls
    # (no-op cast on the default f32 path).
    u = u.astype(w_ref.dtype)

    # Stage 2: origin-graph (Chebyshev T0) contraction.  Per batch element and
    # Chebyshev order these are small [N, N] @ [N, C*H] dots; kept as plain 2-D
    # dots over static slices to avoid an in-kernel lane<->sublane relayout of u.
    for bt in range(b_tile):
        acc = bias_ref[...]                               # [1, C*H] f32 (init = bias)
        for o in range(K):
            g_o = g_ref[o * N:(o + 1) * N, :]                      # [N, N]
            u_o = u[bt * N:(bt + 1) * N, o * CH:(o + 1) * CH]      # [N, C*H]
            acc = acc + jnp.dot(g_o, u_o, preferred_element_type=jnp.float32)
        if activation is not None:
            acc = activation(acc)
        o_ref[bt * N:(bt + 1) * N, :] = acc.astype(o_ref.dtype)


def chebyshev_stack(G, K):
    """T_0 = I, T_1 = G, T_k = 2 G T_{k-1} - T_{k-2}; returns [K, n, n]."""
    n = G.shape[0]
    T = [jnp.eye(n, dtype=G.dtype), G]
    for _ in range(2, K):
        T.append(2.0 * (G @ T[-1]) - T[-2])
    return jnp.stack(T[:K], axis=0)


def _pick_batch_tile(B, N, target_rows=256):
    """Batch elements per grid step: fill >= target_rows MXU rows, keep an even
    grid with >= 2 steps whenever B >= 2 (v7x megacore / pipelining), and keep
    the row block sublane-aligned when tiling."""
    bt = max(1, min(B, _cdiv(target_rows, N), 64))
    n_tiles = _cdiv(B, bt)
    if n_tiles == 1 and B >= 2:
        n_tiles = 2                       # give both v7x TensorCores a step
    if n_tiles > 1 and n_tiles % 2 == 1:
        n_tiles += 1                      # even grid for megacore balance
    bt = _cdiv(B, n_tiles)                # rebalance to minimise batch padding
    if n_tiles > 1:
        while (bt * N) % 8 != 0:          # sublane alignment of the row block
            bt += 1
    n_tiles = _cdiv(B, bt)
    if n_tiles > 1 and n_tiles % 2 == 1:
        n_tiles += 1
    if n_tiles == 1:                      # single step -> cover exactly B
        bt = B
    return bt, n_tiles


def odconv_forward(X, G, W, b, K, activation=None, param_dtype=jnp.float32):
    """Pallas implementation of ODconv.forward.

    X: [B, N, C, L]; G: tuple of ([N,N], [C,C]) adjacencies (Chebyshev built
       here) or a pre-stacked [K, N, N] tensor (requires N == C, as in the
       module); W: [K*K*L, H]; b: [H] or None.  Returns [B, N, C, H].
    """
    B, N, C, L = X.shape
    KKL, H = W.shape
    assert KKL == K * K * L, (KKL, K, L)

    if isinstance(G, tuple):
        assert len(G) == 2 and G[0].ndim == 2 and G[1].ndim == 2
        T0 = chebyshev_stack(G[0], K)                    # [K, N, N]
        T1 = chebyshev_stack(G[1], K)                    # [K, C, C]
    else:
        assert G.shape[-3] == K
        assert N == C and G.shape[-1] == N, "stacked G requires N == C"
        T0 = T1 = G

    CH = C * H

    # ---- one-time graph / parameter preprocessing (tiny, plain JAX) ----------
    # Origin-graph operator, rows (o, m):  G0T[o*N + m, n] = T0[o, n, m].
    G0T = jnp.transpose(T0, (0, 2, 1)).reshape(K * N, N)

    # Destination graph folded into W; columns ordered (o, d, h) so stage 1
    # covers all K origin orders in one dot:
    #   WG1[l*C + c, o*C*H + d*H + h] = sum_p T1[p, c, d] * W[(o*K + p)*L + l, h]
    W4 = W.reshape(K, K, L, H)                           # [o, p, l, h]
    WG1 = jnp.einsum('pcd,oplh->lcodh', T1, W4).reshape(L * C, K * CH)

    bias = b if b is not None else jnp.zeros((H,), dtype=jnp.float32)
    bias_t = jnp.tile(bias.astype(jnp.float32), C).reshape(1, CH)

    # Batch tiling (B_TILE batch elements per grid step).
    b_tile, n_tiles = _pick_batch_tile(B, N)
    B_pad = b_tile * n_tiles

    # X [B, N, C, L] -> rows (b, n), cols (l, c); zero-pad batch to B_pad.
    X2 = jnp.transpose(X, (0, 1, 3, 2)).reshape(B, N, L * C)
    if B_pad > B:
        X2 = jnp.concatenate(
            [X2, jnp.zeros((B_pad - B, N, L * C), X2.dtype)], axis=0)
    X2 = X2.reshape(B_pad * N, L * C)

    # bf16 params halve HBM/DMA bytes on v6e/v7x; accumulation stays f32.
    G0T = G0T.astype(param_dtype)
    WG1 = WG1.astype(param_dtype)
    X2 = X2.astype(param_dtype)

    # VMEM budget from the real block footprints: streamed X/out blocks double
    # buffered, invariants single buffered, plus the stage-1 intermediate and
    # ~50% headroom.  No 32 MiB floor (v7x only has 64 MiB physical VMEM).
    p_item = jnp.dtype(param_dtype).itemsize
    streamed = 2 * (b_tile * N * L * C * p_item + b_tile * N * CH * 4)
    resident = (K * N * N + L * C * K * CH) * p_item + CH * 4
    interm = b_tile * N * K * CH * 4
    vmem_limit = int(min(100 * 1024 * 1024,
                         max(4 * 1024 * 1024,
                             (streamed + resident + interm) * 3 // 2 + (2 << 20))))

    # TODO(synk): for very large graphs (K*L*C*C*H approaching ~24 MiB) add a
    # second grid axis tiling the C*H output columns so WG1 need not be fully
    # resident on v7x's 64 MiB VMEM.

    kernel = functools.partial(_odconv_kernel, b_tile, K, N, CH, activation)
    invariant = dict(pipeline_mode=pl.Buffered(1))       # single-buffer invariants
    out = pl.pallas_call(
        kernel,
        out_shape=jax.ShapeDtypeStruct((B_pad * N, CH), jnp.float32),
        grid=(n_tiles,),
        in_specs=[
            pl.BlockSpec((b_tile * N, L * C), lambda i: (i, 0)),          # X tile
            pl.BlockSpec((K * N, N), lambda i: (0, 0), **invariant),      # G0T
            pl.BlockSpec((L * C, K * CH), lambda i: (0, 0), **invariant), # WG1
            pl.BlockSpec((1, CH), lambda i: (0, 0), **invariant),         # bias
        ],
        out_specs=pl.BlockSpec((b_tile * N, CH), lambda i: (i, 0)),
        compiler_params=pltpu.CompilerParams(
            dimension_semantics=("parallel",),
            vmem_limit_bytes=vmem_limit,
        ),
    )(X2, G0T, WG1, bias_t)

    # Free view back to the module's [B, N, C, H] layout (pad sliced off).
    return out.reshape(B_pad, N, C, H)[:B]


def odconv_reference(X, G, W, b, K):
    """Plain-JAX mirror of the PyTorch forward (for validation)."""
    if isinstance(G, tuple):
        T0 = chebyshev_stack(G[0], K)
        T1 = chebyshev_stack(G[1], K)
    else:
        T0 = T1 = G
    feats = []
    for o in range(K):
        for d in range(K):
            m1 = jnp.einsum('bncl,nm->bmcl', X, T0[o])
            m2 = jnp.einsum('bmcl,cd->bmdl', m1, T1[d])
            feats.append(m2)
    f2 = jnp.concatenate(feats, axis=-1)
    out = jnp.einsum('bmdk,kh->bmdh', f2, W)
    if b is not None:
        out = out + b
    return out


if __name__ == "__main__":
    # Small shapes consistent with the module: K=3, input_dim=4, hidden_dim=16,
    # batch=2, N=C=8 graph nodes.  (C*H = 128 -> lane-dense output block.)
    B, N, C, L, K, Hd = 2, 8, 8, 4, 3, 16

    key = jax.random.PRNGKey(0)
    k1, k2, k3, k4 = jax.random.split(key, 4)
    X = jax.random.normal(k1, (B, N, C, L), dtype=jnp.float32)
    G0 = jax.random.uniform(k2, (N, N), dtype=jnp.float32) / N
    G1 = jax.random.uniform(k3, (C, C), dtype=jnp.float32) / C

    # Deterministic parameters matching __init__ shapes:
    # W: xavier_normal over [input_dim * K^2, hidden_dim]; b: [hidden_dim]
    # (non-zero here so the bias-tiling path is actually exercised).
    fan_in, fan_out = K * K * L, Hd
    std = (2.0 / (fan_in + fan_out)) ** 0.5
    W = std * jax.random.normal(k4, (fan_in, fan_out), dtype=jnp.float32)
    b = 0.05 * jnp.arange(Hd, dtype=jnp.float32)

    out = odconv_forward(X, (G0, G1), W, b, K, activation=None)
    out = jax.block_until_ready(out)

    ref = odconv_reference(X, (G0, G1), W, b, K)
    assert out.shape == (B, N, C, Hd), out.shape
    err = float(jnp.max(jnp.abs(out - ref)))
    assert jnp.allclose(out, ref, atol=1e-4, rtol=1e-4), err

    print("KERNEL_OK")
</pallas_src>

<mosaic_0001>
module attributes {stable_mosaic.version = 11 : i64} {
  func.func @_odconv_kernel(%arg0: i32, %arg1: memref<8x32xf32, #tpu.memory_space<vmem>>, %arg2: memref<24x8xf32, #tpu.memory_space<vmem>>, %arg3: memref<32x384xf32, #tpu.memory_space<vmem>>, %arg4: memref<1x128xf32, #tpu.memory_space<vmem>>, %arg5: memref<8x128xf32, #tpu.memory_space<vmem>>) attributes {dimension_semantics = [#tpu.dimension_semantics<parallel>], iteration_bounds = array<i64: 2>, scalar_prefetch = 0 : i64, scratch_operands = 0 : i64, tpu.core_type = #tpu.core_type<tc>, window_params = [{transform_indices = @transform_0, window_bounds = array<i64: 8, 32>}, {pipeline_mode = #tpu.pipeline_mode<synchronous>, transform_indices = @transform_1, window_bounds = array<i64: 24, 8>}, {pipeline_mode = #tpu.pipeline_mode<synchronous>, transform_indices = @transform_2, window_bounds = array<i64: 32, 384>}, {pipeline_mode = #tpu.pipeline_mode<synchronous>, transform_indices = @transform_3, window_bounds = array<i64: 1, 128>}, {transform_indices = @transform_4, window_bounds = array<i64: 8, 128>}]} {
    %c0 = arith.constant 0 : index
    %c0_0 = arith.constant 0 : index
    %0 = vector.load %arg1[%c0, %c0_0] : memref<8x32xf32, #tpu.memory_space<vmem>>, vector<8x32xf32>
    %c0_1 = arith.constant 0 : index
    %c0_2 = arith.constant 0 : index
    %1 = vector.load %arg3[%c0_1, %c0_2] : memref<32x384xf32, #tpu.memory_space<vmem>>, vector<32x384xf32>
    %cst = arith.constant dense<0.000000e+00> : vector<8x384xf32>
    %2 = tpu.matmul %0, %1, %cst {dimension_numbers = #tpu.dot_dimension_numbers<[1], [0], [0], [1], [0, 0, 1, 1], [], []>} : vector<8x32xf32>, vector<32x384xf32>, vector<8x384xf32> -> vector<8x384xf32>
    %c0_3 = arith.constant 0 : index
    %c0_4 = arith.constant 0 : index
    %3 = vector.load %arg4[%c0_3, %c0_4] : memref<1x128xf32, #tpu.memory_space<vmem>>, vector<1x128xf32>
    %c0_5 = arith.constant 0 : index
    %c0_6 = arith.constant 0 : index
    %4 = vector.load %arg2[%c0_5, %c0_6] : memref<24x8xf32, #tpu.memory_space<vmem>>, vector<8x8xf32>
    %5 = vector.extract_strided_slice %2 {offsets = [0, 0], sizes = [8, 128], strides = [1, 1]} : vector<8x384xf32> to vector<8x128xf32>
    %cst_7 = arith.constant dense<0.000000e+00> : vector<8x128xf32>
    %6 = tpu.matmul %4, %5, %cst_7 {dimension_numbers = #tpu.dot_dimension_numbers<[1], [0], [0], [1], [0, 0, 1, 1], [], []>} : vector<8x8xf32>, vector<8x128xf32>, vector<8x128xf32> -> vector<8x128xf32>
    %7 = vector.broadcast %3 : vector<1x128xf32> to vector<8x128xf32>
    %8 = arith.addf %7, %6 : vector<8x128xf32>
    %c8 = arith.constant 8 : index
    %c0_8 = arith.constant 0 : index
    %9 = vector.load %arg2[%c8, %c0_8] : memref<24x8xf32, #tpu.memory_space<vmem>>, vector<8x8xf32>
    %10 = vector.extract_strided_slice %2 {offsets = [0, 128], sizes = [8, 128], strides = [1, 1]} : vector<8x384xf32> to vector<8x128xf32>
    %cst_9 = arith.constant dense<0.000000e+00> : vector<8x128xf32>
    %11 = tpu.matmul %9, %10, %cst_9 {dimension_numbers = #tpu.dot_dimension_numbers<[1], [0], [0], [1], [0, 0, 1, 1], [], []>} : vector<8x8xf32>, vector<8x128xf32>, vector<8x128xf32> -> vector<8x128xf32>
    %12 = arith.addf %8, %11 : vector<8x128xf32>
    %c16 = arith.constant 16 : index
    %c0_10 = arith.constant 0 : index
    %13 = vector.load %arg2[%c16, %c0_10] : memref<24x8xf32, #tpu.memory_space<vmem>>, vector<8x8xf32>
    %14 = vector.extract_strided_slice %2 {offsets = [0, 256], sizes = [8, 128], strides = [1, 1]} : vector<8x384xf32> to vector<8x128xf32>
    %cst_11 = arith.constant dense<0.000000e+00> : vector<8x128xf32>
    %15 = tpu.matmul %13, %14, %cst_11 {dimension_numbers = #tpu.dot_dimension_numbers<[1], [0], [0], [1], [0, 0, 1, 1], [], []>} : vector<8x8xf32>, vector<8x128xf32>, vector<8x128xf32> -> vector<8x128xf32>
    %16 = arith.addf %12, %15 : vector<8x128xf32>
    %c0_12 = arith.constant 0 : index
    %c0_13 = arith.constant 0 : index
    %17 = vector.load %arg5[%c0_12, %c0_13] : memref<8x128xf32, #tpu.memory_space<vmem>>, vector<8x128xf32>
    tpu.vector_store %arg5[%c0_12, %c0_13], %16 {strides = array<i32>} : memref<8x128xf32, #tpu.memory_space<vmem>>, vector<8x128xf32>,
    return
  }
  func.func @transform_0(%arg0: i32) -> (i32, i32) {
    %c0_i32 = arith.constant 0 : i32
    %c0_i32_0 = arith.constant 0 : i32
    return %arg0, %c0_i32 : i32, i32
  }
  func.func @transform_1(%arg0: i32) -> (i32, i32) {
    %c0_i32 = arith.constant 0 : i32
    %c0_i32_0 = arith.constant 0 : i32
    %c0_i32_1 = arith.constant 0 : i32
    return %c0_i32, %c0_i32_0 : i32, i32
  }
  func.func @transform_2(%arg0: i32) -> (i32, i32) {
    %c0_i32 = arith.constant 0 : i32
    %c0_i32_0 = arith.constant 0 : i32
    %c0_i32_1 = arith.constant 0 : i32
    return %c0_i32, %c0_i32_0 : i32, i32
  }
  func.func @transform_3(%arg0: i32) -> (i32, i32) {
    %c0_i32 = arith.constant 0 : i32
    %c0_i32_0 = arith.constant 0 : i32
    %c0_i32_1 = arith.constant 0 : i32
    return %c0_i32, %c0_i32_0 : i32, i32
  }
  func.func @transform_4(%arg0: i32) -> (i32, i32) {
    %c0_i32 = arith.constant 0 : i32
    %c0_i32_0 = arith.constant 0 : i32
    return %arg0, %c0_i32 : i32, i32
  }
}

</mosaic_0001>

<bundles_post_ra>
// kernel: tpu_custom_call.1
= control target key start
LH: loop header
LB: loop body
LE: loop exit
PB: predicated region body
PF: predicated region fallthrough
CT: control target
= control target key end

     0   :  { %9 = vsyncpa [#allocation3], 0  ;;  %s1096_s0 = inlined_call_operand.vmem [shape: f32[16,32], index: 0, kind: input, shape index: {}]   ;;  %s1097_s1 = inlined_call_operand.vmem [shape: f32[24,8], index: 1, kind: input, shape index: {}]   ;;  %s1098_s2 = inlined_call_operand.hbm [shape: f32[32,384], index: 2, kind: input, shape index: {}]   ;;  %s1099_s3 = inlined_call_operand.vmem [shape: f32[1,128], index: 3, kind: input, shape index: {}]   ;;  %s1100_s4 = inlined_call_operand.hbm [shape: f32[16,128], index: 4, kind: output, shape index: {}]  }
   0x1   :  { %10 = vsyncpa [#allocation4], 0 }
   0x2   :  { %12 = vsyncpa [#allocation4 + $0x1], 0  ;;  %s942_s15 = smov 0   ;;  %s944_s16 = smov 0  }
   0x3   :  { %s946_s17 = smov 0   ;;  %s948_s18 = smov 0  }
   0x4 LB: > { %s963_s19 = sadd.s32 4294967295, %s908_s18   ;;  %s685_s20 = sadd.s32 4294967294, %s908_s18   ;;  %s908_s18 = sphi %s948_s18, %s1116_s18   ;;  %s904_s17 = sphi %s946_s17, %s1115_s17   ;;  %s900_s16 = sphi %s944_s16, %s1114_s16   ;;  %s896_s15 = sphi %s942_s15, %s1113_s15  }
   0x5   : > { %s967_s21 = sadd.s32 1, %s908_s18   ;;  %s114_s22 = sadd.s32 1, %s904_s17 }
   0x6   : > { %s111_s23 = ssub.s32 %s908_s18, %s967_s21  ;;  %p124_p0 = scmp.ne.s32.totalorder %s904_s17, %s900_s16 }
   0x7   : > { %p112_p1 = scmp.eq.s32.totalorder %s111_s23, 0  ;;  %p125_p2 = scmp.eq.s32.totalorder %s963_s19, 1 }
   0x8   : > { %p130_p3 = scmp.ne.s32.totalorder %s900_s16, %s896_s15  ;;  %p131_p4 = scmp.eq.s32.totalorder %s685_s20, 1 }
   0x9   : > { %s978_s24 = scalar_select %p112_p1, %s904_s17, %s114_s22  }
   0xa   : > { %p980_p5 = por %p125_p2, %p124_p0  ;;  %p984_p6 = por %p131_p4, %p130_p3 }
   0xb   : > { %p686_p7 = scmp.ge.s32.totalorder %s908_s18, 1  ;;  %p138_p8 = scmp.lt.s32.totalorder %s908_s18, 3 }
   0xc   : > { %s1104_s25 = scalar_select %p980_p5, 1, 0 }
   0xd   : > { %s1105_s26 = scalar_select %p984_p6, 1, 0 }
   0xe   : > { %p1101_p9 = scmp.eq.s32.totalorder %s963_s19, 0  ;;  %p991_p10 = pnand %p686_p7, %p138_p8 }
   0xf   : > { %s910_s28 = smov [#allocation2]   ;;  %s814_s7 = scalar_lea.hbm %s1098_s2, 1536 }
  0x10   : > { %s1106_s27 = scalar_select %p991_p10, 1, 0 }
  0x11   : > { %s153_s29 = sshll.u32 %s910_s28, 4  ;;  %p765_p11 = pneg %p991_p10  ;;  %s154_s29 = int_to_ptr.vmem [resolvable:$true] %s153_s29 }
  0x12   : > { %p815_p13 = scmp.ne.s32.totalorder %s1098_s2, %s814_s7  ;;  %p821_p3 = scmp.lt.u32.totalorder %s814_s7, %s1098_s2 }
  0x13   : > { %p999_p12 = pnand %p1101_p9, %p765_p11 }
  0x15   : > { %p816_p0 = pneg %p999_p12 }
  0x17   : > { %p817_p1 = pnand %p816_p0, %p815_p13 }
  0x19   : > { %p818_p2 = pneg %p817_p1 }
  0x1b   : > { %p823_p4 = pnand %p821_p3, %p818_p2 }
  0x1d   : > { %826 = shalt.err (!%p823_p4)
}
  0x1e   : > { %s827_s12 = scalar_lea.vmem %s154_s29, 1536  ;;  %p835_p9 = scmp.lt.s32.totalorder %s154_s29, %s154_s29 }
  0x1f   : > { %p828_p7 = scmp.ne.s32.totalorder %s154_s29, %s827_s12  ;;  %p836_p6 = scmp.lt.s32.totalorder %s827_s12, %s827_s12 }
  0x21   : > { %p830_p8 = pnand %p828_p7, %p816_p0  ;;  %p837_p5 = por %p836_p6, %p835_p9 }
  0x23   : > { %p831_p11 = pneg %p830_p8 }
  0x25   : > { %p838_p10 = pnand %p837_p5, %p831_p11 }
  0x27   : > { %841 = shalt.err (!%p838_p10)
}
  0x28   : > { %s911_s13 = smov 384   ;;  %s912_s14 = smov 24  }
  0x29   : > { %768 = dma.hbm_to_vmem [thread:$0]  (!%p999_p12), %s1098_s2, 1536, %s154_s29, [#allocation3], %s911_s13, %s911_s13, %s912_s14  }
  0x2a   : > { %p1108_p13 = scmp.ne.s32.totalorder %s1106_s27, 0 }
  0x2b   : > { %p1109_p1 = scmp.eq.s32.totalorder (!%p1108_p13), %s963_s19, 0 }
  0x2c   : > { %179 = sbr.rel (%p1108_p13) target bundleno = 520 (0x208), region = 36 }
  0x33   : > { %887 = dma.done.wait (%p1109_p1), [#allocation3], 1536   ;;  %p1110_p0 = pmov %p1109_p1 }
  0x34   : > { %v913_v0 = vmov 0.0   ;;  %p204_p5 = scmp.lt.s32.totalorder %s963_s19, 1  ;;  %vm914_vm0 = vmmov 0   ;;  %v210_v1 = vld [vmem:[#allocation2 + $0x8] sm:$0xff]  ;;  %v213_v2 = vld [vmem:[#allocation2 + $0x20] sm:$0xff]  ;;  %v212_v5 = vld [vmem:[#allocation2 + $0x18] sm:$0xff] }
  0x35   : > { %889 = vsyncadd (%p1110_p0), [#allocation3], 4294965760  ;;  %289 = vmatprep.mubr.f32.mxu1 %v913_v0  ;;  %725 = vmatprep.subr.mxu0 %v913_v0  ;;  %v209_v3 = vld [vmem:[#allocation2] sm:$0xff]  ;;  %v740_v4 = vpack.c.bf16 %v213_v2, %v210_v1  ;;  %v216_v6 = vld [vmem:[#allocation2 + $0x38] sm:$0xff]  ;;  %vm221_vm1 = vcmask 261120   ;;  %v915_v17 = vmov 0.0|0.0  }
  0x36   : > { %727 = vmatprep.mubr.msk.f32.mxu0 %vm914_vm0, %v913_v0  ;;  %s205_s23 = scalar_select %p204_p5, %s963_s19, 1  ;;  %v219_v7 = vld [vmem:[#allocation2 + $0x50] sm:$0xff]  ;;  %v742_v8 = vpack.c.bf16 %v212_v5, %v209_v3  ;;  %v218_v11 = vld [vmem:[#allocation2 + $0x48] sm:$0xff]  ;;  %v217_v18 = vld [vmem:[#allocation2 + $0x40] sm:$0xff]  ;;  %vm368_vm2 = vcmask 64512  }
  0x37   : > { %v744_v9 = vpack.c.bf16 %v219_v7, %v216_v6  ;;  %v215_v10 = vld [vmem:[#allocation2 + $0x30] sm:$0xff]  ;;  %741 = vmatprep.subr.bf16.mxu1 %v740_v4  ;;  %v214_v14 = vld [vmem:[#allocation2 + $0x28] sm:$0xff]  ;;  %v220_v19 = vld [vmem:[#allocation2 + $0x58] sm:$0xff]  ;;  %s201_s11 = sand.u32 1, %s900_s16   ;;  %s700_s20 = sshll.u32 %s963_s19, 7 }
  0x38   : > { %s692_s27 = sshll.u32 %s205_s23, 3  ;;  %743 = vmatpush1.bf16.msra.mxu1 %v742_v8  ;;  %v746_v12 = vpack.c.bf16 %v218_v11, %v215_v10  ;;  %v211_v13 = vld [vmem:[#allocation2 + $0x10] sm:$0xff]  ;;  %v752_v20 = vpack.c.bf16 %v220_v19, %v217_v18  ;;  %v367_v21 = vld [vmem:[%s1097_s1] sm:$0xff]  ;;  %v449_v24 = vld [vmem:[%s1097_s1 + $0x8] sm:$0xff]  ;;  %s691_s12 = sshll.u32 %s201_s11, 3 }
  0x39   : > { %745 = vmatprep.subr.bf16.mxu1 %v744_v9  ;;  %s207_s30 = scalar_lea.vmem %s1096_s0, %s692_s27  ;;  %v749_v16 = vpack.c.bf16 %v214_v14, %v211_v13  ;;  %v524_v27 = vld [vmem:[%s1097_s1 + $0x10] sm:$0xff]  ;;  %v696_v28 = vld [vmem:[%s1099_s3] ss:$0 sm:$0xff]  ;;  %s203_s22 = scalar_lea.vmem [#allocation5], %s691_s12 }
  0x3a   : > { %v208_v15 = vld [vmem:[%s207_s30] sm:$0xff]  ;;  %s614_s23 = sshll.u32 %s203_s22, 4  ;;  %s1054_s29 = scalar_lea.hbm %s1100_s4, %s700_s20  ;;  %s1056_s23 = int_to_ptr.vmem [resolvable:$true] %s614_s23 }
  0x3b   : > { %s601_s30 = scalar_lea.sflag [#allocation4], %s201_s11  ;;  %s842_s5 = scalar_lea.vmem %s1056_s23, 128 }
  0x3c   : > { %747 = vmatpush1.bf16.msra.mxu1 %v746_v12  ;;  %p843_p6 = scmp.ne.s32.totalorder %s1056_s23, %s842_s5  ;;  %p1111_p9 = scmp.ne.s32.totalorder %s1104_s25, 0 }
  0x3d   : > { %748 = vmatprep.subr.bf16.mxu1 %v915_v17  ;;  %s916_s19 = smov [#allocation5]  }
  0x3e   : > { %p844_p10 = pnand %p843_p6, %p1111_p9  ;;  %s846_s6 = sshll.u32 %s916_s19, 4  ;;  %s847_s6 = int_to_ptr.vmem [resolvable:$false] %s846_s6 }
  0x3f   : > { %693 = vmatmul.mubr.msk.f32.vlgmr.msra.gmra.mrb[0].mxu1 %vm221_vm1, %v208_v15  ;;  %s848_s7 = scalar_lea.vmem %s847_s6, 256  ;;  %p849_p2 = scmp.lt.s32.totalorder %s1056_s23, %s847_s6 }
  0x40   : > { %750 = vmatpush3.bf16.msra.mxu1 %v749_v16  ;;  %722 = vmatprep.mubr.msk.f32.mxu1 %vm914_vm0, %v913_v0  ;;  %p845_p12 = pneg %p844_p10  ;;  %p850_p3 = scmp.lt.s32.totalorder %s848_s7, %s842_s5 }
  0x41   : > { %751 = vmatprep.subr.bf16.mxu1 %v915_v17 }
  0x42   : > { %p851_p4 = por %p850_p3, %p849_p2 }
  0x44   : > { %753 = vmatpush3.bf16.msra.mxu1 %v752_v20  ;;  %p852_p7 = pnand %p851_p4, %p845_p12 }
  0x47   : > { %723 = vmatmul.mubr.msk.f32.vlgmr.msra.gmra.mrb[2].mxu1 %vm221_vm1, %v208_v15 }
 0x112   : > { %v291_v22 = vpop.f32.mrb[0].mxu1 }
 0x113   : > { %v293_v23 = vpop.f32.mrb[1].mxu1  ;;  %726 = vmatpush3.msra.mxu0 %v291_v22 }
 0x114   : > { %728 = vmatmul.mubr.msk.f32.vlgmr.msra.gmra.mrb[0].mxu0 %vm368_vm2, %v367_v21  ;;  %730 = vmatprep.subr.mxu0 %v913_v0 }
 0x115   : > { %731 = vmatpush3.msra.mxu0 %v293_v23  ;;  %732 = vmatprep.mubr.msk.f32.mxu0 %vm914_vm0, %v913_v0 }
 0x116   : > { %735 = vmatprep.subr.mxu0 %v913_v0 }
 0x11a   : > { %v362_v25 = vpop.f32.mrb[2].mxu1 }
 0x11b   : > { %v724_v26 = vpop.f32.mrb[3].mxu1 }
 0x11c   : > { %733 = vmatmul.mubr.msk.f32.vlgmr.msra.gmra.mrb[0].mxu0 %vm368_vm2, %v449_v24 }
 0x11d   : > { %736 = vmatpush3.msra.mxu0 %v362_v25  ;;  %737 = vmatprep.mubr.msk.f32.mxu0 %vm914_vm0, %v913_v0 }
 0x124   : > { %738 = vmatmul.mubr.msk.f32.vlgmr.msra.gmra.mrb[0].mxu0 %vm368_vm2, %v524_v27 }
 0x1f7   : > { %v594_v29 = vpop.f32.mrb[0].mxu0 }
 0x1f8   : > { %v754_v30 = vadd.f32 %v696_v28, %v594_v29  ;;  %v739_v31 = vpop.f32.mrb[1].mxu0 }
 0x1fa   : > { %599 = vst [vmem:[%s203_s22] sm:$0xff] %v754_v30 }
 0x1fb   : > { %855 = shalt.err (!%p852_p7)
}
 0x1fc   : > { %s856_s8 = scalar_lea.hbm %s1054_s29, 128  ;;  %s860_s11 = scalar_lea.hbm %s1100_s4, 256 }
 0x1fd   : > { %p857_p8 = scmp.ne.s32.totalorder %s1054_s29, %s856_s8  ;;  %p861_p1 = scmp.lt.u32.totalorder %s1054_s29, %s1100_s4 }
 0x1fe   : > { %p862_p0 = scmp.lt.u32.totalorder %s860_s11, %s856_s8  ;;  %p864_p6 = scmp.lt.u32.totalorder %s856_s8, %s1054_s29 }
 0x1ff   : > { %p858_p11 = pnand %p857_p8, %p1111_p9 }
 0x200   : > { %p863_p5 = por %p862_p0, %p861_p1 }
 0x201   : > { %p859_p13 = pneg %p858_p11 }
 0x202   : > { %p865_p10 = por %p864_p6, %p863_p5 }
 0x204   : > { %p866_p12 = pnand %p865_p10, %p859_p13 }
 0x206   : > { %869 = shalt.err (!%p866_p12)
}
 0x207   : > { %763 = dma.vmem_to_hbm [thread:$0]  (%p1111_p9), %s1056_s23, 128, %s1054_s29, %s601_s30  }
 0x208 PF: > { %p775_p2 = scmp.ge.s32.totalorder %s908_s18, 2  ;;  %s626_s14 = sand.u32 1, %s896_s15  }
 0x209   : > { %p1112_p3 = scmp.ne.s32.totalorder %s1105_s26, 0  ;;  %s627_s20 = scalar_lea.sflag [#allocation4], %s626_s14 }
 0x20b   : > { %p770_p4 = pnand %p775_p2, %p1112_p3 }
 0x20d   : > { %891 = dma.done.wait (!%p770_p4), %s627_s20, 128  }
 0x20e   : > { %893 = vsyncadd (!%p770_p4), %s627_s20, 4294967168  ;;  %p15_p7 = scmp.ge.s32.totalorder %s967_s21, 4   ;;  %s1113_s15 = smov %s900_s16 }
 0x20f   : > { %s1114_s16 = smov %s904_s17  ;;  %s1115_s17 = smov %s978_s24 }
 0x210   : > { %s1116_s18 = smov %s967_s21  ;;  %17 = sbr.rel (!%p15_p7) target bundleno = 4 (0x4), region = 76 }
 0x217   :  { %632 = vsyncpa [#allocation3], 1 }
 0x218   :  { %634 = vsyncpa [#allocation3 + $0x1], 1 }
 0x219   :  { %635 = vsyncpa [#allocation4], 1 }
 0x21a   :  { %637 = vsyncpa [#allocation4 + $0x1], 1 }

</bundles_post_ra>
